<compile_context>
chip_gen: v7x
topology: tpu7x:2x2x1
jax: 0.10.0
libtpu: 0.0.40
codegen_flags: <defaults>
</compile_context>

<pallas_src>
import functools

import jax
import jax.numpy as jnp
from jax.experimental import pallas as pl
from jax.experimental.pallas import tpu as pltpu

_LANES = 128
_ACC_SUBLANES = 8          # f32 accumulator tile rows
_MAX_BLOCK_ROWS = 4096     # (4096, 128) f32 = 2 MiB per input block


def _cdiv(a, b):
    return -(-a // b)


def _round_up(x, m):
    return ((x + m - 1) // m) * m


def _sublane_multiple(*dtypes):
    """Minimum sublane multiple for the input tiles: 8 (f32), 16 (bf16), 32 (i8/fp8)."""
    m = _ACC_SUBLANES
    for dt in dtypes:
        itemsize = jnp.dtype(dt).itemsize
        m = max(m, (4 // max(1, itemsize)) * _ACC_SUBLANES)
    return m


def _tensorcores_per_chip():
    """2 TensorCores per chip on v7x; 1 on v5e/v6e (conservative default 1)."""
    try:
        dev = jax.devices()[0]
        if dev.platform != "tpu":
            return 1
        kind = str(getattr(dev, "device_kind", "")).lower()
        if "v7" in kind or "7x" in kind:
            return 2
    except Exception:  # defensive: never let detection break the kernel
        pass
    return 1


def _rmse_partial_kernel(fake_ref, real_ref, out_ref, *,
                         block_rows, steps_per_core, rows_valid, two_core):
    if two_core:
        c = pl.program_id(0)           # CORE_PARALLEL axis
        i = pl.program_id(1)           # reduction axis
        step = c * steps_per_core + i
    else:
        i = pl.program_id(0)
        step = i

    @pl.when(i == 0)
    def _():
        out_ref[...] = jnp.zeros_like(out_ref)

    start = step * block_rows

    def _fold(sq):
        # Sublane fold into the resident (8, 128) accumulator: pure VPU adds.
        # The single cross-lane reduce happens once in the wrapper.
        return jnp.sum(
            sq.reshape(block_rows // _ACC_SUBLANES, _ACC_SUBLANES, _LANES),
            axis=0)

    is_tail = start + block_rows > rows_valid

    # Fast path: fully in-range block -> 3 VPU ops/element (sub, mul, fold-add).
    @pl.when(jnp.logical_not(is_tail))
    def _():
        diff = (real_ref[...].astype(jnp.float32)
                - fake_ref[...].astype(jnp.float32))
        out_ref[...] += _fold(diff * diff)

    # Slow path: only the (at most one per core) ragged / out-of-range block
    # pays for the row mask.  OOB rows of the block may contain garbage; the
    # select zeroes them before squaring, so NaN/Inf garbage is harmless.
    @pl.when(is_tail)
    def _():
        row_ids = start + jax.lax.broadcasted_iota(
            jnp.int32, (block_rows, _LANES), 0)
        mask = row_ids < rows_valid
        diff = (real_ref[...].astype(jnp.float32)
                - fake_ref[...].astype(jnp.float32))
        diff = jnp.where(mask, diff, 0.0)
        out_ref[...] += _fold(diff * diff)


def rmse_depth_loss(fake, real):
    """JAX/Pallas equivalent of RMSEDepthLoss.forward (NCHW inputs)."""
    if fake.shape != real.shape:
        # TODO(synk): this materializes the upsampled `fake` in HBM; fusing the
        # bilinear lerp into the kernel (scalar-prefetched source-row map +
        # manual DMA of the few needed rows) would remove that extra traffic.
        # jax.image.resize('bilinear') uses half-pixel sampling, matching
        # PyTorch F.upsample(mode='bilinear') with align_corners=False.
        N, C = fake.shape[0], fake.shape[1]
        H, W = real.shape[2], real.shape[3]
        fake = jax.image.resize(fake, (N, C, H, W), method="bilinear")

    n_elems = 1
    for d in real.shape:
        n_elems *= d

    fake_flat = jnp.ravel(fake)
    real_flat = jnp.ravel(real)
    n_main = (n_elems // _LANES) * _LANES

    # Tail of < 128 elements (non-lane-aligned shapes) handled in plain JAX so
    # the kernel never needs a full-array pad/copy in HBM.
    total_sq = jnp.float32(0.0)
    if n_main < n_elems:
        tail_d = (real_flat[n_main:].astype(jnp.float32)
                  - fake_flat[n_main:].astype(jnp.float32))
        total_sq = total_sq + jnp.sum(tail_d * tail_d)

    if n_main > 0:
        rows = n_main // _LANES
        fake2d = fake_flat[:n_main].reshape(rows, _LANES)
        real2d = real_flat[:n_main].reshape(rows, _LANES)

        sub = _sublane_multiple(fake2d.dtype, real2d.dtype)
        block_rows = min(_MAX_BLOCK_ROWS, _round_up(rows, sub))
        steps_total = _cdiv(rows, block_rows)

        num_cores = 2 if (_tensorcores_per_chip() == 2 and steps_total > 1) else 1
        two_core = num_cores == 2
        steps_per_core = _cdiv(steps_total, num_cores)

        in_itemsize = (jnp.dtype(fake2d.dtype).itemsize
                       + jnp.dtype(real2d.dtype).itemsize)

        kernel = functools.partial(
            _rmse_partial_kernel,
            block_rows=block_rows,
            steps_per_core=steps_per_core,
            rows_valid=rows,
            two_core=two_core,
        )

        cost = pl.CostEstimate(
            flops=3 * n_main,
            transcendentals=0,
            bytes_accessed=n_main * in_itemsize
            + num_cores * _ACC_SUBLANES * _LANES * 4,
        )

        if two_core:
            grid = (num_cores, steps_per_core)

            def in_index_map(c, i):
                # Out-of-range steps (odd steps_total) clamp onto the last
                # block; the kernel's row mask zeroes their contribution.
                return (jnp.minimum(c * steps_per_core + i, steps_total - 1), 0)

            out_spec = pl.BlockSpec((_ACC_SUBLANES, _LANES), lambda c, i: (c, 0))
            dim_sem = (pltpu.CORE_PARALLEL, pltpu.ARBITRARY)
        else:
            grid = (steps_total,)

            def in_index_map(i):
                return (i, 0)

            out_spec = pl.BlockSpec((_ACC_SUBLANES, _LANES), lambda i: (0, 0))
            dim_sem = ("arbitrary",)

        partial = pl.pallas_call(
            kernel,
            out_shape=jax.ShapeDtypeStruct(
                (num_cores * _ACC_SUBLANES, _LANES), jnp.float32),
            grid_spec=pltpu.PrefetchScalarGridSpec(
                num_scalar_prefetch=0,
                grid=grid,
                in_specs=[
                    pl.BlockSpec((block_rows, _LANES), in_index_map),
                    pl.BlockSpec((block_rows, _LANES), in_index_map),
                ],
                out_specs=out_spec,
            ),
            compiler_params=pltpu.CompilerParams(
                dimension_semantics=dim_sem,
                # >= 2 inputs x 2 buffers x 2 MiB blocks + f32 intermediates;
                # 32 MiB is within every chip's budget (v7x scoped default).
                vmem_limit_bytes=32 * 1024 * 1024,
            ),
            cost_estimate=cost,
        )(fake2d, real2d)

        total_sq = total_sq + jnp.sum(partial)

    # 10 * sqrt(mean(d^2)) == sqrt(mean((10*d)^2))
    return 10.0 * jnp.sqrt(total_sq / jnp.float32(n_elems))


if __name__ == "__main__":
    key = jax.random.PRNGKey(0)
    k1, k2, k3, k4 = jax.random.split(key, 4)

    # Main check: small NCHW, lane-aligned numel (2048), same shapes.
    fake = jax.random.normal(k1, (2, 4, 16, 16), dtype=jnp.float32)
    real = jax.random.normal(k2, (2, 4, 16, 16), dtype=jnp.float32)
    loss = rmse_depth_loss(fake, real)
    jax.block_until_ready(loss)
    ref = jnp.sqrt(jnp.mean(jnp.abs(10.0 * real - 10.0 * fake) ** 2))
    assert jnp.allclose(loss, ref, rtol=1e-5, atol=1e-5), (loss, ref)

    # Second check: non-128-divisible numel (858) exercises the ragged-block
    # row mask and the in-wrapper lane tail.
    fake2 = jax.random.normal(k3, (2, 3, 11, 13), dtype=jnp.float32)
    real2 = jax.random.normal(k4, (2, 3, 11, 13), dtype=jnp.float32)
    loss2 = rmse_depth_loss(fake2, real2)
    jax.block_until_ready(loss2)
    ref2 = jnp.sqrt(jnp.mean(jnp.abs(10.0 * real2 - 10.0 * fake2) ** 2))
    assert jnp.allclose(loss2, ref2, rtol=1e-5, atol=1e-5), (loss2, ref2)

    print("KERNEL_OK")
</pallas_src>

<mosaic_0001>
module attributes {stable_mosaic.version = 11 : i64} {
  func.func @_rmse_partial_kernel(%arg0: i32, %arg1: memref<16x128xf32, #tpu.memory_space<vmem>>, %arg2: memref<16x128xf32, #tpu.memory_space<vmem>>, %arg3: memref<8x128xf32, #tpu.memory_space<vmem>>) attributes {dimension_semantics = [#tpu.dimension_semantics<arbitrary>], iteration_bounds = array<i64: 1>, scalar_prefetch = 0 : i64, scratch_operands = 0 : i64, tpu.core_type = #tpu.core_type<tc>, window_params = [{transform_indices = @transform_0, window_bounds = array<i64: 16, 128>}, {transform_indices = @transform_1, window_bounds = array<i64: 16, 128>}, {pipeline_mode = #tpu.pipeline_mode<synchronous>, transform_indices = @transform_2, window_bounds = array<i64: 8, 128>}]} {
    %c0_i32 = arith.constant 0 : i32
    %0 = arith.cmpi eq, %arg0, %c0_i32 : i32
    %1 = arith.extui %0 : i1 to i32
    %c0_i32_0 = arith.constant 0 : i32
    %2 = arith.cmpi ne, %1, %c0_i32_0 : i32
    scf.if %2 {
      %cst = arith.constant 0.000000e+00 : f32
      %11 = vector.broadcast %cst : f32 to vector<8x128xf32>
      %c0 = arith.constant 0 : index
      %c0_5 = arith.constant 0 : index
      %12 = vector.load %arg3[%c0, %c0_5] : memref<8x128xf32, #tpu.memory_space<vmem>>, vector<8x128xf32>
      tpu.vector_store %arg3[%c0, %c0_5], %11 {strides = array<i32>} : memref<8x128xf32, #tpu.memory_space<vmem>>, vector<8x128xf32>,
    } else {
    }
    %c16_i32 = arith.constant 16 : i32
    %3 = arith.muli %arg0, %c16_i32 : i32
    %c16_i32_1 = arith.constant 16 : i32
    %4 = arith.addi %3, %c16_i32_1 : i32
    %c16_i32_2 = arith.constant 16 : i32
    %5 = arith.cmpi sgt, %4, %c16_i32_2 : i32
    %true = arith.constant true
    %6 = arith.xori %5, %true : i1
    %7 = arith.extui %6 : i1 to i32
    %c0_i32_3 = arith.constant 0 : i32
    %8 = arith.cmpi ne, %7, %c0_i32_3 : i32
    scf.if %8 {
      %c0 = arith.constant 0 : index
      %c0_5 = arith.constant 0 : index
      %11 = vector.load %arg2[%c0, %c0_5] : memref<16x128xf32, #tpu.memory_space<vmem>>, vector<16x128xf32>
      %c0_6 = arith.constant 0 : index
      %c0_7 = arith.constant 0 : index
      %12 = vector.load %arg1[%c0_6, %c0_7] : memref<16x128xf32, #tpu.memory_space<vmem>>, vector<16x128xf32>
      %13 = arith.subf %11, %12 : vector<16x128xf32>
      %c0_8 = arith.constant 0 : index
      %c0_9 = arith.constant 0 : index
      %14 = vector.load %arg3[%c0_8, %c0_9] : memref<8x128xf32, #tpu.memory_space<vmem>>, vector<8x128xf32>
      %15 = arith.mulf %13, %13 : vector<16x128xf32>
      %16 = vector.shape_cast %15 : vector<16x128xf32> to vector<2x8x128xf32>
      %cst = arith.constant dense<0.000000e+00> : vector<8x128xf32>
      %17 = vector.multi_reduction <add>, %16, %cst [0] : vector<2x8x128xf32> to vector<8x128xf32>
      %18 = arith.addf %14, %17 : vector<8x128xf32>
      %c0_10 = arith.constant 0 : index
      %c0_11 = arith.constant 0 : index
      %19 = vector.load %arg3[%c0_10, %c0_11] : memref<8x128xf32, #tpu.memory_space<vmem>>, vector<8x128xf32>
      tpu.vector_store %arg3[%c0_10, %c0_11], %18 {strides = array<i32>} : memref<8x128xf32, #tpu.memory_space<vmem>>, vector<8x128xf32>,
    } else {
    }
    %9 = arith.extui %5 : i1 to i32
    %c0_i32_4 = arith.constant 0 : i32
    %10 = arith.cmpi ne, %9, %c0_i32_4 : i32
    scf.if %10 {
      %11 = tpu.iota {dimensions = array<i32: 0>} : vector<16x128xi32>
      %12 = vector.broadcast %3 : i32 to vector<16x128xi32>
      %13 = arith.addi %12, %11 : vector<16x128xi32>
      %c16_i32_5 = arith.constant 16 : i32
      %14 = vector.broadcast %c16_i32_5 : i32 to vector<16x128xi32>
      %15 = arith.cmpi slt, %13, %14 : vector<16x128xi32>
      %c0 = arith.constant 0 : index
      %c0_6 = arith.constant 0 : index
      %16 = vector.load %arg2[%c0, %c0_6] : memref<16x128xf32, #tpu.memory_space<vmem>>, vector<16x128xf32>
      %c0_7 = arith.constant 0 : index
      %c0_8 = arith.constant 0 : index
      %17 = vector.load %arg1[%c0_7, %c0_8] : memref<16x128xf32, #tpu.memory_space<vmem>>, vector<16x128xf32>
      %18 = arith.subf %16, %17 : vector<16x128xf32>
      %cst = arith.constant 0.000000e+00 : f32
      %19 = vector.broadcast %cst : f32 to vector<16x128xf32>
      %20 = arith.select %15, %18, %19 : vector<16x128xi1>, vector<16x128xf32>
      %c0_9 = arith.constant 0 : index
      %c0_10 = arith.constant 0 : index
      %21 = vector.load %arg3[%c0_9, %c0_10] : memref<8x128xf32, #tpu.memory_space<vmem>>, vector<8x128xf32>
      %22 = arith.mulf %20, %20 : vector<16x128xf32>
      %23 = vector.shape_cast %22 : vector<16x128xf32> to vector<2x8x128xf32>
      %cst_11 = arith.constant dense<0.000000e+00> : vector<8x128xf32>
      %24 = vector.multi_reduction <add>, %23, %cst_11 [0] : vector<2x8x128xf32> to vector<8x128xf32>
      %25 = arith.addf %21, %24 : vector<8x128xf32>
      %c0_12 = arith.constant 0 : index
      %c0_13 = arith.constant 0 : index
      %26 = vector.load %arg3[%c0_12, %c0_13] : memref<8x128xf32, #tpu.memory_space<vmem>>, vector<8x128xf32>
      tpu.vector_store %arg3[%c0_12, %c0_13], %25 {strides = array<i32>} : memref<8x128xf32, #tpu.memory_space<vmem>>, vector<8x128xf32>,
    } else {
    }
    return
  }
  func.func @transform_0(%arg0: i32) -> (i32, i32) {
    %c0_i32 = arith.constant 0 : i32
    %c0_i32_0 = arith.constant 0 : i32
    return %arg0, %c0_i32 : i32, i32
  }
  func.func @transform_1(%arg0: i32) -> (i32, i32) {
    %c0_i32 = arith.constant 0 : i32
    %c0_i32_0 = arith.constant 0 : i32
    return %arg0, %c0_i32 : i32, i32
  }
  func.func @transform_2(%arg0: i32) -> (i32, i32) {
    %c0_i32 = arith.constant 0 : i32
    %c0_i32_0 = arith.constant 0 : i32
    %c0_i32_1 = arith.constant 0 : i32
    return %c0_i32, %c0_i32_0 : i32, i32
  }
}

</mosaic_0001>

<bundles_post_ra>
// kernel: tpu_custom_call.1
= control target key start
LH: loop header
LB: loop body
LE: loop exit
PB: predicated region body
PF: predicated region fallthrough
CT: control target
= control target key end

     0   :  { %7 = vsyncpa [#allocation3], 0  ;;  %s239_s0 = inlined_call_operand.hbm [shape: f32[16,128], index: 0, kind: input, shape index: {}]   ;;  %s240_s1 = inlined_call_operand.hbm [shape: f32[16,128], index: 1, kind: input, shape index: {}]   ;;  %s241_s2 = inlined_call_operand.hbm [shape: f32[8,128], index: 2, kind: output, shape index: {}]  }
   0x1   :  { %8 = vsyncpa [#allocation6], 0 }
   0x2   :  { %9 = vsyncpa [#allocation4], 0  ;;  %s183_s9 = smov [#allocation2]   ;;  %s111_s13 = scalar_lea.hbm %s239_s0, 256 }
   0x3   :  { %s15_s10 = sshll.u32 %s183_s9, 4  ;;  %p112_p0 = scmp.ne.s32.totalorder %s239_s0, %s111_s13  ;;  %s16_s10 = int_to_ptr.vmem [resolvable:$true] %s15_s10 }
   0x4   :  { %p115_p1 = scmp.lt.u32.totalorder %s111_s13, %s239_s0 }
   0x6   :  { %p117_p2 = pnand %p115_p1, %p112_p0 }
   0x8   :  { %120 = shalt.err (!%p117_p2)
}
   0x9   :  { %s121_s18 = scalar_lea.vmem %s16_s10, 256  ;;  %p126_p4 = scmp.lt.s32.totalorder %s16_s10, %s16_s10 }
   0xa   :  { %p122_p3 = scmp.ne.s32.totalorder %s16_s10, %s121_s18  ;;  %p127_p5 = scmp.lt.s32.totalorder %s121_s18, %s121_s18 }
   0xc   :  { %p128_p6 = por %p127_p5, %p126_p4 }
   0xe   :  { %p129_p7 = pnand %p128_p6, %p122_p3 }
  0x10   :  { %132 = shalt.err (!%p129_p7)
}
  0x11   :  { %s184_s19 = smov 128   ;;  %s185_s20 = smov 8  }
  0x12   :  { %21 = dma.hbm_to_vmem [thread:$0]  %s239_s0, 256, %s16_s10, [#allocation3], %s184_s19, %s184_s19, %s185_s20  }
  0x13   :  { %s186_s23 = smov [#allocation5]   ;;  %s133_s27 = scalar_lea.hbm %s240_s1, 256 }
  0x14   :  { %s27_s24 = sshll.u32 %s186_s23, 4  ;;  %p134_p8 = scmp.ne.s32.totalorder %s240_s1, %s133_s27  ;;  %s28_s24 = int_to_ptr.vmem [resolvable:$true] %s27_s24 }
  0x15   :  { %p137_p9 = scmp.lt.u32.totalorder %s133_s27, %s240_s1 }
  0x17   :  { %p139_p10 = pnand %p137_p9, %p134_p8 }
  0x19   :  { %142 = shalt.err (!%p139_p10)
}
  0x1a   :  { %s143_s4 = scalar_lea.vmem %s28_s24, 256  ;;  %p148_p12 = scmp.lt.s32.totalorder %s28_s24, %s28_s24 }
  0x1b   :  { %p144_p11 = scmp.ne.s32.totalorder %s28_s24, %s143_s4  ;;  %p149_p13 = scmp.lt.s32.totalorder %s143_s4, %s143_s4 }
  0x1d   :  { %p150_p0 = por %p149_p13, %p148_p12 }
  0x1f   :  { %p151_p1 = pnand %p150_p0, %p144_p11 }
  0x21   :  { %154 = shalt.err (!%p151_p1)
}
  0x22   :  { %33 = dma.hbm_to_vmem [thread:$0]  %s240_s1, 256, %s28_s24, [#allocation6], %s184_s19, %s184_s19, %s185_s20  }
  0x23   :  { %177 = dma.done.wait [#allocation3], 256  }
  0x24   :  { %178 = vsyncadd [#allocation3], 4294967040 }
  0x25   :  { %179 = dma.done.wait [#allocation6], 256  }
  0x26   :  { %180 = vsyncadd [#allocation6], 4294967040  ;;  %v52_v0 = vld [vmem:[#allocation5] sm:$0xff]  ;;  %v53_v1 = vld [vmem:[#allocation5 + $0x8] sm:$0xff]  ;;  %s187_s6 = smov [#allocation7]  }
  0x27   :  { %v54_v2 = vld [vmem:[#allocation2] sm:$0xff]  ;;  %v55_v3 = vld [vmem:[#allocation2 + $0x8] sm:$0xff]  ;;  %s95_s7 = sshll.u32 %s187_s6, 4  ;;  %s96_s7 = int_to_ptr.vmem [resolvable:$true] %s95_s7 }
  0x28   :  { %v56_v4 = vsub.f32 %v52_v0, %v54_v2  ;;  %v57_v5 = vsub.f32 %v53_v1, %v55_v3  ;;  %s155_s8 = scalar_lea.vmem %s96_s7, 128  ;;  %p160_p3 = scmp.lt.s32.totalorder %s96_s7, %s96_s7 }
  0x29   :  { %p156_p2 = scmp.ne.s32.totalorder %s96_s7, %s155_s8  ;;  %p161_p4 = scmp.lt.s32.totalorder %s155_s8, %s155_s8 }
  0x2a   :  { %v59_v6 = vmul.f32 %v56_v4, %v56_v4  ;;  %v60_v7 = vmul.f32 %v57_v5, %v57_v5 }
  0x2b   :  { %p162_p5 = por %p161_p4, %p160_p3 }
  0x2c   :  { %v61_v8 = vadd.f32 %v60_v7, %v59_v6 }
  0x2d   :  { %p163_p6 = pnand %p162_p5, %p156_p2 }
  0x2e   :  { %63 = vst [vmem:[#allocation7] sm:$0xff] %v61_v8 }
  0x2f   :  { %166 = shalt.err (!%p163_p6)
}
  0x30   :  { %s167_s10 = scalar_lea.hbm %s241_s2, 128 }
  0x31   :  { %p168_p7 = scmp.ne.s32.totalorder %s241_s2, %s167_s10  ;;  %p171_p8 = scmp.lt.u32.totalorder %s167_s10, %s241_s2 }
  0x33   :  { %p173_p9 = pnand %p171_p8, %p168_p7 }
  0x35   :  { %176 = shalt.err (!%p173_p9)
}
  0x36   :  { %98 = dma.vmem_to_hbm [thread:$0]  %s96_s7, 128, %s241_s2, [#allocation4]  }
  0x37   :  { %181 = dma.done.wait [#allocation4], 128  }
  0x38   :  { %182 = vsyncadd [#allocation4], 4294967168 }
  0x39   :  { %102 = vsyncpa [#allocation3], 1 }
  0x3a   :  { %103 = vsyncpa [#allocation6], 1 }
  0x3b   :  { %104 = vsyncpa [#allocation4], 1 }

</bundles_post_ra>
